<compile_context>
chip_gen: v7x
topology: tpu7x:2x2x1
jax: 0.10.0
libtpu: 0.0.40
codegen_flags: <defaults>
</compile_context>

<pallas_src>
import functools
import math

import jax
import jax.numpy as jnp
from jax.experimental import pallas as pl
from jax.experimental.pallas import tpu as pltpu


def _round_up(x, m):
    return (x + m - 1) // m * m


def _vae_latent_kernel(h_ref, w_ref, b_ref, eps_ref, z_ref, mu_ref, lv_ref,
                       *, d_pad, var_eps):
    # h_ref  : [TM, D_in]        activations (compute dtype)
    # w_ref  : [D_in, 2*D_pad]   [W_mu^T | W_sigma^T], zero-padded, resident
    # b_ref  : [1, 2*D_pad]      [b_mu | b_sigma] f32, zero-padded, resident
    # eps_ref: [TM, D_pad]       N(0,1) noise (zeros in eval mode -> z == mu)
    # z_ref  : [TM, D_pad]       z = mu + sigma * eps
    # mu_ref : [TM, D_pad]       mu (f32, consumed by KL in the wrapper)
    # lv_ref : [TM, D_pad]       log_var after clamp / var_eps rewrite (f32)
    acc = jnp.dot(h_ref[...], w_ref[...], preferred_element_type=jnp.float32)
    acc = acc + b_ref[...]                      # f32 bias add after accumulate
    mu = acc[:, :d_pad]
    log_var = jnp.clip(acc[:, d_pad:], -5.0, 5.0)
    if var_eps:
        sigma = jnp.sqrt(jnp.exp(log_var) + 1e-4)
        log_var = 2.0 * jnp.log(sigma)
    else:
        sigma = jnp.exp(0.5 * log_var)
    z = mu + sigma * eps_ref[...].astype(jnp.float32)
    z_ref[...] = z.astype(z_ref.dtype)
    mu_ref[...] = mu
    lv_ref[...] = log_var


@functools.lru_cache(maxsize=None)
def _build_latent_call(b_pad, tm, d_in, d_pad, compute_dtype, z_dtype, var_eps):
    kernel = functools.partial(_vae_latent_kernel, d_pad=d_pad, var_eps=var_eps)
    return pl.pallas_call(
        kernel,
        out_shape=(
            jax.ShapeDtypeStruct((b_pad, d_pad), z_dtype),       # z
            jax.ShapeDtypeStruct((b_pad, d_pad), jnp.float32),   # mu
            jax.ShapeDtypeStruct((b_pad, d_pad), jnp.float32),   # log_var
        ),
        grid_spec=pl.GridSpec(
            grid=(b_pad // tm,),
            in_specs=[
                pl.BlockSpec((tm, d_in), lambda i: (i, 0)),          # h tile
                pl.BlockSpec((d_in, 2 * d_pad), lambda i: (0, 0)),   # weights, stay resident
                pl.BlockSpec((1, 2 * d_pad), lambda i: (0, 0)),      # bias, stays resident
                pl.BlockSpec((tm, d_pad), lambda i: (i, 0)),         # eps tile
            ],
            out_specs=(
                pl.BlockSpec((tm, d_pad), lambda i: (i, 0)),
                pl.BlockSpec((tm, d_pad), lambda i: (i, 0)),
                pl.BlockSpec((tm, d_pad), lambda i: (i, 0)),
            ),
        ),
        compiler_params=pltpu.CompilerParams(
            dimension_semantics=("parallel",)),   # batch tiles are independent (megacore)
    )


@functools.partial(jax.jit, static_argnames=("latent_dim", "var_eps", "training"))
def _vae_latent_apply(h, w_cat_t, b_cat, eps, kl_weight, lamda,
                      *, latent_dim, var_eps, training):
    B, d_in = h.shape
    d_pad = w_cat_t.shape[1] // 2

    # Batch tile: multiple of 8 sublanes, capped so double-buffered tiles stay
    # tiny (fits comfortably in v7x's 64 MiB VMEM; no vmem_limit override needed).
    tm = min(_round_up(max(B, 1), 8), 512)
    b_pad = _round_up(B, tm)

    hp = h.astype(w_cat_t.dtype)
    if b_pad != B:
        hp = jnp.pad(hp, ((0, b_pad - B), (0, 0)))
    eps_p = jnp.zeros((b_pad, d_pad), jnp.float32).at[:B, :latent_dim].set(eps)

    call = _build_latent_call(b_pad, tm, d_in, d_pad,
                              w_cat_t.dtype, h.dtype, var_eps)
    z_full, mu_full, lv_full = call(hp, w_cat_t, b_cat, eps_p)

    z = z_full[:B, :latent_dim]
    if training:
        mu = mu_full[:B, :latent_dim]
        lv = lv_full[:B, :latent_dim]
        kl = -0.5 * jnp.mean(jnp.sum(1.0 + lv - mu * mu - jnp.exp(lv), axis=1))
        kl = kl * kl_weight
        kl = jnp.where(kl < lamda, 0.0, kl)
    else:
        kl = jnp.float32(0.0)
    return z, kl


class VAELatentLayer:
    """JAX/Pallas port of VAELatentLayer: fused (hid_2mu | hid_2sigma) Linear +
    clamp + var_eps rewrite + reparameterization in one TPU kernel."""

    def __init__(self, enc_hid, latent_dim, kl_weight=1.0, warmup_step=10000,
                 lamda=1.0, *, key, compute_dtype=jnp.float32, **kwargs):
        self.enc_hid = enc_hid
        self.latent_dim = latent_dim
        self.kl_weight = 0.0
        self.max_kl_weight = kl_weight
        self.step_count = 0
        self.warmup_step = warmup_step
        self.is_adversarial = False
        self.lamda = lamda
        self.training = False
        self.compute_dtype = compute_dtype  # use jnp.bfloat16 on v6e/v7x for ~2x bandwidth

        k1, k2, k3, k4 = jax.random.split(key, 4)
        bound = 1.0 / math.sqrt(enc_hid)
        # PyTorch nn.Linear convention [out, in] kept for the reference check.
        self.w_mu = jax.random.uniform(k1, (latent_dim, enc_hid), jnp.float32, -bound, bound)
        self.b_mu = jax.random.uniform(k2, (latent_dim,), jnp.float32, -bound, bound)
        self.w_sigma = jax.random.uniform(k3, (latent_dim, enc_hid), jnp.float32, -bound, bound)
        self.b_sigma = jax.random.uniform(k4, (latent_dim,), jnp.float32, -bound, bound)

        # One-time kernel packing: pre-transposed, concatenated, lane-padded.
        d_pad = _round_up(latent_dim, 128)
        self.d_pad = d_pad
        w_cat_t = jnp.zeros((enc_hid, 2 * d_pad), jnp.float32)
        w_cat_t = w_cat_t.at[:, :latent_dim].set(self.w_mu.T)
        w_cat_t = w_cat_t.at[:, d_pad:d_pad + latent_dim].set(self.w_sigma.T)
        self.w_cat_t = w_cat_t.astype(compute_dtype)
        b_cat = jnp.zeros((1, 2 * d_pad), jnp.float32)
        b_cat = b_cat.at[0, :latent_dim].set(self.b_mu)
        b_cat = b_cat.at[0, d_pad:d_pad + latent_dim].set(self.b_sigma)
        self.b_cat = b_cat  # kept f32: added after the f32 accumulate

    def kl_schedule_step(self):
        self.step_count += 1
        if self.step_count < self.warmup_step:
            self.kl_weight = self.kl_weight + self.max_kl_weight / self.warmup_step
        elif self.step_count == self.warmup_step:
            pass

    def forward(self, x_dict, m='', var_eps=True, key=None):
        h = x_dict['h']
        B = h.shape[0]
        if self.training:
            if key is None:
                raise ValueError("training-mode forward needs a PRNG key for eps")
            eps = jax.random.normal(key, (B, self.latent_dim), jnp.float32)
        else:
            # eval: z = mu exactly (eps = 0)
            eps = jnp.zeros((B, self.latent_dim), jnp.float32)

        z, kl = _vae_latent_apply(
            h, self.w_cat_t, self.b_cat, eps,
            jnp.asarray(self.kl_weight, jnp.float32),
            jnp.asarray(self.lamda, jnp.float32),
            latent_dim=self.latent_dim, var_eps=var_eps, training=self.training)

        if self.training:
            self.kl_schedule_step()
            return z, kl, 0
        return z, 0, 0

    __call__ = forward


if __name__ == "__main__":
    key = jax.random.PRNGKey(0)
    k_param, k_h, k_eps = jax.random.split(key, 3)

    enc_hid, latent_dim, batch = 32, 16, 8
    layer = VAELatentLayer(enc_hid, latent_dim, kl_weight=1.0, key=k_param)

    h = jax.random.normal(k_h, (batch, enc_hid), jnp.float32)
    x_dict = {'h': h}

    # --- Eval-mode forward: z == mu, kl == 0 --------------------------------
    z, kl, aux = layer(x_dict)
    z = jax.block_until_ready(z)

    mu_ref = h @ layer.w_mu.T + layer.b_mu
    assert z.shape == (batch, latent_dim)
    assert jnp.allclose(z, mu_ref, atol=1e-5, rtol=1e-5)
    assert kl == 0 and aux == 0

    # --- Training-mode forward: reparameterized z + KL vs pure-JAX reference
    layer.training = True
    layer.kl_weight = 0.5
    z_t, kl_t, _ = layer(x_dict, key=k_eps)
    jax.block_until_ready((z_t, kl_t))

    eps = jax.random.normal(k_eps, (batch, latent_dim), jnp.float32)
    lv_c = jnp.clip(h @ layer.w_sigma.T + layer.b_sigma, -5.0, 5.0)
    sigma_ref = jnp.sqrt(jnp.exp(lv_c) + 1e-4)
    lv_ref = 2.0 * jnp.log(sigma_ref)
    z_ref = mu_ref + sigma_ref * eps
    kl_ref = -0.5 * jnp.mean(jnp.sum(1.0 + lv_ref - mu_ref ** 2 - jnp.exp(lv_ref), axis=1)) * 0.5
    kl_ref = jnp.where(kl_ref < layer.lamda, 0.0, kl_ref)

    assert z_t.shape == (batch, latent_dim)
    assert jnp.allclose(z_t, z_ref, atol=1e-5, rtol=1e-5)
    assert jnp.allclose(kl_t, kl_ref, atol=1e-4, rtol=1e-4)
    assert layer.step_count == 1  # warmup schedule advanced host-side

    print("KERNEL_OK")
</pallas_src>

<mosaic_0001>
module attributes {stable_mosaic.version = 11 : i64} {
  func.func @_vae_latent_kernel(%arg0: i32, %arg1: memref<8x32xf32, #tpu.memory_space<vmem>>, %arg2: memref<32x256xf32, #tpu.memory_space<vmem>>, %arg3: memref<1x256xf32, #tpu.memory_space<vmem>>, %arg4: memref<8x128xf32, #tpu.memory_space<vmem>>, %arg5: memref<8x128xf32, #tpu.memory_space<vmem>>, %arg6: memref<8x128xf32, #tpu.memory_space<vmem>>, %arg7: memref<8x128xf32, #tpu.memory_space<vmem>>) attributes {dimension_semantics = [#tpu.dimension_semantics<parallel>], iteration_bounds = array<i64: 1>, scalar_prefetch = 0 : i64, scratch_operands = 0 : i64, tpu.core_type = #tpu.core_type<tc>, window_params = [{transform_indices = @transform_0, window_bounds = array<i64: 8, 32>}, {pipeline_mode = #tpu.pipeline_mode<synchronous>, transform_indices = @transform_1, window_bounds = array<i64: 32, 256>}, {pipeline_mode = #tpu.pipeline_mode<synchronous>, transform_indices = @transform_2, window_bounds = array<i64: 1, 256>}, {transform_indices = @transform_3, window_bounds = array<i64: 8, 128>}, {transform_indices = @transform_4, window_bounds = array<i64: 8, 128>}, {transform_indices = @transform_5, window_bounds = array<i64: 8, 128>}, {transform_indices = @transform_6, window_bounds = array<i64: 8, 128>}]} {
    %c0 = arith.constant 0 : index
    %c0_0 = arith.constant 0 : index
    %0 = vector.load %arg1[%c0, %c0_0] : memref<8x32xf32, #tpu.memory_space<vmem>>, vector<8x32xf32>
    %c0_1 = arith.constant 0 : index
    %c0_2 = arith.constant 0 : index
    %1 = vector.load %arg2[%c0_1, %c0_2] : memref<32x256xf32, #tpu.memory_space<vmem>>, vector<32x256xf32>
    %cst = arith.constant dense<0.000000e+00> : vector<8x256xf32>
    %2 = tpu.matmul %0, %1, %cst {dimension_numbers = #tpu.dot_dimension_numbers<[1], [0], [0], [1], [0, 0, 1, 1], [], []>} : vector<8x32xf32>, vector<32x256xf32>, vector<8x256xf32> -> vector<8x256xf32>
    %c0_3 = arith.constant 0 : index
    %c0_4 = arith.constant 0 : index
    %3 = vector.load %arg3[%c0_3, %c0_4] : memref<1x256xf32, #tpu.memory_space<vmem>>, vector<1x256xf32>
    %4 = vector.broadcast %3 : vector<1x256xf32> to vector<8x256xf32>
    %5 = arith.addf %2, %4 : vector<8x256xf32>
    %6 = vector.extract_strided_slice %5 {offsets = [0, 0], sizes = [8, 128], strides = [1, 1]} : vector<8x256xf32> to vector<8x128xf32>
    %7 = vector.extract_strided_slice %5 {offsets = [0, 128], sizes = [8, 128], strides = [1, 1]} : vector<8x256xf32> to vector<8x128xf32>
    %cst_5 = arith.constant -5.000000e+00 : f32
    %cst_6 = arith.constant 5.000000e+00 : f32
    %8 = vector.broadcast %cst_5 : f32 to vector<8x128xf32>
    %9 = arith.maximumf %8, %7 : vector<8x128xf32>
    %10 = vector.broadcast %cst_6 : f32 to vector<8x128xf32>
    %11 = arith.minimumf %10, %9 : vector<8x128xf32>
    %12 = math.exp %11 : vector<8x128xf32>
    %cst_7 = arith.constant 9.99999974E-5 : f32
    %13 = vector.broadcast %cst_7 : f32 to vector<8x128xf32>
    %14 = arith.addf %12, %13 : vector<8x128xf32>
    %15 = math.sqrt %14 : vector<8x128xf32>
    %16 = math.log %15 : vector<8x128xf32>
    %cst_8 = arith.constant 2.000000e+00 : f32
    %17 = vector.broadcast %cst_8 : f32 to vector<8x128xf32>
    %18 = arith.mulf %17, %16 : vector<8x128xf32>
    %c0_9 = arith.constant 0 : index
    %c0_10 = arith.constant 0 : index
    %19 = vector.load %arg4[%c0_9, %c0_10] : memref<8x128xf32, #tpu.memory_space<vmem>>, vector<8x128xf32>
    %20 = arith.mulf %15, %19 : vector<8x128xf32>
    %21 = arith.addf %6, %20 : vector<8x128xf32>
    %c0_11 = arith.constant 0 : index
    %c0_12 = arith.constant 0 : index
    %22 = vector.load %arg5[%c0_11, %c0_12] : memref<8x128xf32, #tpu.memory_space<vmem>>, vector<8x128xf32>
    tpu.vector_store %arg5[%c0_11, %c0_12], %21 {strides = array<i32>} : memref<8x128xf32, #tpu.memory_space<vmem>>, vector<8x128xf32>,
    %c0_13 = arith.constant 0 : index
    %c0_14 = arith.constant 0 : index
    %23 = vector.load %arg6[%c0_13, %c0_14] : memref<8x128xf32, #tpu.memory_space<vmem>>, vector<8x128xf32>
    tpu.vector_store %arg6[%c0_13, %c0_14], %6 {strides = array<i32>} : memref<8x128xf32, #tpu.memory_space<vmem>>, vector<8x128xf32>,
    %c0_15 = arith.constant 0 : index
    %c0_16 = arith.constant 0 : index
    %24 = vector.load %arg7[%c0_15, %c0_16] : memref<8x128xf32, #tpu.memory_space<vmem>>, vector<8x128xf32>
    tpu.vector_store %arg7[%c0_15, %c0_16], %18 {strides = array<i32>} : memref<8x128xf32, #tpu.memory_space<vmem>>, vector<8x128xf32>,
    return
  }
  func.func @transform_0(%arg0: i32) -> (i32, i32) {
    %c0_i32 = arith.constant 0 : i32
    %c0_i32_0 = arith.constant 0 : i32
    return %arg0, %c0_i32 : i32, i32
  }
  func.func @transform_1(%arg0: i32) -> (i32, i32) {
    %c0_i32 = arith.constant 0 : i32
    %c0_i32_0 = arith.constant 0 : i32
    %c0_i32_1 = arith.constant 0 : i32
    return %c0_i32, %c0_i32_0 : i32, i32
  }
  func.func @transform_2(%arg0: i32) -> (i32, i32) {
    %c0_i32 = arith.constant 0 : i32
    %c0_i32_0 = arith.constant 0 : i32
    %c0_i32_1 = arith.constant 0 : i32
    return %c0_i32, %c0_i32_0 : i32, i32
  }
  func.func @transform_3(%arg0: i32) -> (i32, i32) {
    %c0_i32 = arith.constant 0 : i32
    %c0_i32_0 = arith.constant 0 : i32
    return %arg0, %c0_i32 : i32, i32
  }
  func.func @transform_4(%arg0: i32) -> (i32, i32) {
    %c0_i32 = arith.constant 0 : i32
    %c0_i32_0 = arith.constant 0 : i32
    return %arg0, %c0_i32 : i32, i32
  }
  func.func @transform_5(%arg0: i32) -> (i32, i32) {
    %c0_i32 = arith.constant 0 : i32
    %c0_i32_0 = arith.constant 0 : i32
    return %arg0, %c0_i32 : i32, i32
  }
  func.func @transform_6(%arg0: i32) -> (i32, i32) {
    %c0_i32 = arith.constant 0 : i32
    %c0_i32_0 = arith.constant 0 : i32
    return %arg0, %c0_i32 : i32, i32
  }
}

</mosaic_0001>

<bundles_post_ra>
// kernel: _vae_latent_apply.1
= control target key start
LH: loop header
LB: loop body
LE: loop exit
PB: predicated region body
PF: predicated region fallthrough
CT: control target
= control target key end

     0   :  { %12 = vsyncpa [#allocation3], 0  ;;  %s411_s0 = inlined_call_operand.vmem [shape: f32[8,32], index: 0, kind: input, shape index: {}]   ;;  %s412_s1 = inlined_call_operand.hbm [shape: f32[32,256], index: 1, kind: input, shape index: {}]   ;;  %s413_s2 = inlined_call_operand.vmem [shape: f32[1,256], index: 2, kind: input, shape index: {}]   ;;  %s414_s3 = inlined_call_operand.vmem [shape: f32[8,128], index: 3, kind: input, shape index: {}]   ;;  %s415_s4 = inlined_call_operand.hbm [shape: f32[8,128], index: 4, kind: output, shape index: {0}]   ;;  %s416_s5 = inlined_call_operand.hbm [shape: f32[8,128], index: 5, kind: output, shape index: {1}]   ;;  %s417_s6 = inlined_call_operand.hbm [shape: f32[8,128], index: 6, kind: output, shape index: {2}]  }
   0x1   :  { %13 = vsyncpa [#allocation4], 0 }
   0x2   :  { %14 = vsyncpa [#allocation7], 0  ;;  %s312_s21 = smov [#allocation2]   ;;  %s218_s25 = scalar_lea.hbm %s412_s1, 1024 }
   0x3   :  { %s22_s22 = sshll.u32 %s312_s21, 4  ;;  %p219_p0 = scmp.ne.s32.totalorder %s412_s1, %s218_s25  ;;  %s23_s22 = int_to_ptr.vmem [resolvable:$true] %s22_s22 }
   0x4   :  { %p222_p1 = scmp.lt.u32.totalorder %s218_s25, %s412_s1 }
   0x6   :  { %p224_p2 = pnand %p222_p1, %p219_p0 }
   0x8   :  { %227 = shalt.err (!%p224_p2)
}
   0x9   :  { %s228_s30 = scalar_lea.vmem %s23_s22, 1024  ;;  %p233_p4 = scmp.lt.s32.totalorder %s23_s22, %s23_s22 }
   0xa   :  { %p229_p3 = scmp.ne.s32.totalorder %s23_s22, %s228_s30  ;;  %p234_p5 = scmp.lt.s32.totalorder %s228_s30, %s228_s30 }
   0xc   :  { %p235_p6 = por %p234_p5, %p233_p4 }
   0xe   :  { %p236_p7 = pnand %p235_p6, %p229_p3 }
  0x10   :  { %239 = shalt.err (!%p236_p7)
}
  0x11   :  { %s313_s7 = smov 256   ;;  %s314_s8 = smov 16  }
  0x12   :  { %28 = dma.hbm_to_vmem [thread:$0]  %s412_s1, 1024, %s23_s22, [#allocation3], %s313_s7, %s313_s7, %s314_s8  }
  0x13   :  { %306 = dma.done.wait [#allocation3], 1024  }
  0x14   :  { %307 = vsyncadd [#allocation3], 4294966272  ;;  %v315_v0 = vmov 0.0   ;;  %v38_v1 = vld [vmem:[#allocation2 + $0x8] sm:$0xff]  ;;  %v40_v2 = vld [vmem:[#allocation2 + $0x18] sm:$0xff]  ;;  %vm57_vm0 = vcmask 261120   ;;  %v47_v14 = vlaneseq }
  0x15   :  { %125 = vmatprep.mubr.f32.mxu0 %v315_v0  ;;  %v37_v3 = vld [vmem:[#allocation2] sm:$0xff]  ;;  %v197_v4 = vpack.c.bf16 %v40_v2, %v38_v1  ;;  %v39_v5 = vld [vmem:[#allocation2 + $0x10] sm:$0xff]  ;;  %v42_v6 = vld [vmem:[#allocation2 + $0x28] sm:$0xff]  ;;  %s316_s14 = smov [#allocation6]  }
  0x16   :  { %v44_v7 = vld [vmem:[#allocation2 + $0x38] sm:$0xff]  ;;  %v199_v8 = vpack.c.bf16 %v39_v5, %v37_v3  ;;  %v41_v10 = vld [vmem:[#allocation2 + $0x20] sm:$0xff]  ;;  %v43_v11 = vld [vmem:[#allocation2 + $0x30] sm:$0xff]  ;;  %v48_v15 = vshrl.u32 %v47_v14, 7  ;;  %s169_s15 = sshll.u32 %s316_s14, 4  ;;  %s170_s15 = int_to_ptr.vmem [resolvable:$true] %s169_s15 }
  0x17   :  { %v201_v9 = vpack.c.bf16 %v44_v7, %v42_v6  ;;  %198 = vmatprep.subr.bf16.mxu0 %v197_v4  ;;  %v203_v12 = vpack.c.bf16 %v43_v11, %v41_v10  ;;  %v36_v13 = vld [vmem:[%s411_s0] sm:$0xff]  ;;  %s240_s0 = scalar_lea.vmem %s170_s15, 128  ;;  %p245_p9 = scmp.lt.s32.totalorder %s170_s15, %s170_s15 }
  0x18   :  { %200 = vmatpush1.bf16.msra.mxu0 %v199_v8  ;;  %v49_v16 = vsub.s32 0, %v48_v15  ;;  %v45_v17 = vld [vmem:[%s413_s2] sm:$0x3]  ;;  %v53_v18 = vsub.s32 1, %v48_v15  ;;  %p241_p8 = scmp.ne.s32.totalorder %s170_s15, %s240_s0  ;;  %p246_p10 = scmp.lt.s32.totalorder %s240_s0, %s240_s0 }
  0x19   :  { %202 = vmatprep.subr.bf16.mxu0 %v201_v9 }
  0x1a   :  { %v50_v19 = vrot.slane %v45_v17, %v49_v16  ;;  %v54_v20 = vrot.slane %v45_v17, %v53_v18  ;;  %p247_p11 = por %p246_p10, %p245_p9 }
  0x1c   :  { %204 = vmatpush1.bf16.msra.mxu0 %v203_v12  ;;  %p248_p12 = pnand %p247_p11, %p241_p8 }
  0x1f   :  { %195 = vmatmul.mubr.msk.f32.vlgmr.msra.gmra.mrb[0].mxu0 %vm57_vm0, %v36_v13 }
  0xf2   :  { %v127_v21 = vpop.f32.mrb[0].mxu0 }
  0xf3   :  { %v128_v22 = vadd.f32 %v127_v21, %v50_v19  ;;  %v129_v23 = vpop.f32.mrb[1].mxu0 }
  0xf4   :  { %v130_v24 = vadd.f32 %v129_v23, %v54_v20 }
  0xf5   :  { %151 = vst [vmem:[#allocation6] sm:$0xff] %v128_v22 }
  0xf6   :  { %v196_v25 = vclamps-f32 %v130_v24, 5.0 }
  0xf7   :  { %251 = shalt.err (!%p248_p12)
}
  0xf8   :  { %s252_s17 = scalar_lea.hbm %s416_s5, 128 }
  0xf9   :  { %p253_p13 = scmp.ne.s32.totalorder %s416_s5, %s252_s17  ;;  %p256_p0 = scmp.lt.u32.totalorder %s252_s17, %s416_s5 }
  0xfb   :  { %p258_p1 = pnand %p256_p0, %p253_p13 }
  0xfd   :  { %261 = shalt.err (!%p258_p1)
}
  0xfe   :  { %172 = dma.vmem_to_hbm [thread:$0]  %s170_s15, 128, %s416_s5, [#allocation7]   ;;  %v134_v26 = vmul.f32 1.442695, %v196_v25  ;;  %v147_v32 = vld [vmem:[%s414_s3] sm:$0xff] }
  0xff   :  { %s317_s26 = smov [#allocation5]  }
 0x100   :  { %212 = vpow2.f32 %v134_v26  ;;  %s159_s27 = sshll.u32 %s317_s26, 4  ;;  %s160_s27 = int_to_ptr.vmem [resolvable:$true] %s159_s27 }
 0x101   :  { %s262_s5 = scalar_lea.vmem %s160_s27, 128  ;;  %p267_p3 = scmp.lt.s32.totalorder %s160_s27, %s160_s27 }
 0x102   :  { %p263_p2 = scmp.ne.s32.totalorder %s160_s27, %s262_s5  ;;  %p268_p4 = scmp.lt.s32.totalorder %s262_s5, %s262_s5 }
 0x104   :  { %p269_p5 = por %p268_p4, %p267_p3 }
 0x106   :  { %p270_p6 = pnand %p269_p5, %p263_p2 }
 0x10a   :  { %v213_v27 = vpop.eup %212 }
 0x10b   :  { %v136_v28 = vadd.f32 0.0001, %v213_v27 }
 0x10d   :  { %214 = vrsqrt.f32 %v136_v28  ;;  %vm139_vm1 = vcmp.eq.f32.partialorder %v136_v28, inf  ;;  %v142_v31 = vand.u32 2147483648, %v136_v28  ;;  %vm141_vm2 = vcmp.eq.f32.partialorder %v136_v28, 0.0 }
 0x117   :  { %v215_v29 = vpop.eup %214 }
 0x118   :  { %v138_v30 = vmul.f32 %v215_v29, %v136_v28 }
 0x11a   :  { %v140_v33 = vsel %vm139_vm1, %v136_v28, %v138_v30 }
 0x11b   :  { %v143_v34 = vsel %vm141_vm2, %v142_v31, %v140_v33 }
 0x11c   :  { %216 = vlog2.f32 %v143_v34  ;;  %v148_v35 = vmul.f32 %v147_v32, %v143_v34 }
 0x11e   :  { %v149_v36 = vadd.f32 %v148_v35, %v128_v22 }
 0x120   :  { %150 = vst [vmem:[#allocation5] sm:$0xff] %v149_v36 }
 0x121   :  { %273 = shalt.err (!%p270_p6)
}
 0x122   :  { %s274_s3 = scalar_lea.hbm %s415_s4, 128 }
 0x123   :  { %p275_p7 = scmp.ne.s32.totalorder %s415_s4, %s274_s3  ;;  %p278_p8 = scmp.lt.u32.totalorder %s274_s3, %s415_s4 }
 0x125   :  { %p280_p9 = pnand %p278_p8, %p275_p7 }
 0x127   :  { %283 = shalt.err (!%p280_p9)
}
 0x128   :  { %162 = dma.vmem_to_hbm [thread:$0]  %s160_s27, 128, %s415_s4, [#allocation4]   ;;  %v217_v37 = vpop.eup %216 }
 0x129   :  { %s318_s11 = smov [#allocation8]   ;;  %v145_v38 = vmul.f32 0.6931472, %v217_v37 }
 0x12a   :  { %s179_s12 = sshll.u32 %s318_s11, 4  ;;  %s180_s12 = int_to_ptr.vmem [resolvable:$true] %s179_s12 }
 0x12b   :  { %v146_v39 = vmul.f32 2.0, %v145_v38  ;;  %s284_s13 = scalar_lea.vmem %s180_s12, 128  ;;  %p289_p11 = scmp.lt.s32.totalorder %s180_s12, %s180_s12 }
 0x12c   :  { %p285_p10 = scmp.ne.s32.totalorder %s180_s12, %s284_s13  ;;  %p290_p12 = scmp.lt.s32.totalorder %s284_s13, %s284_s13 }
 0x12d   :  { %152 = vst [vmem:[#allocation8] sm:$0xff] %v146_v39 }
 0x12e   :  { %p291_p13 = por %p290_p12, %p289_p11 }
 0x130   :  { %p292_p0 = pnand %p291_p13, %p285_p10 }
 0x132   :  { %295 = shalt.err (!%p292_p0)
}
 0x133   :  { %s296_s0 = scalar_lea.hbm %s417_s6, 128 }
 0x134   :  { %p297_p1 = scmp.ne.s32.totalorder %s417_s6, %s296_s0  ;;  %p300_p2 = scmp.lt.u32.totalorder %s296_s0, %s417_s6 }
 0x136   :  { %p302_p3 = pnand %p300_p2, %p297_p1 }
 0x138   :  { %305 = shalt.err (!%p302_p3)
}
 0x139   :  { %182 = dma.vmem_to_hbm [thread:$0]  %s180_s12, 128, %s417_s6, [#allocation7]  }
 0x13a   :  { %308 = dma.done.wait [#allocation4], 128  }
 0x13b   :  { %309 = vsyncadd [#allocation4], 4294967168 }
 0x13c   :  { %310 = dma.done.wait [#allocation7], 256  }
 0x13d   :  { %311 = vsyncadd [#allocation7], 4294967040 }
 0x13e   :  { %192 = vsyncpa [#allocation3], 1 }
 0x13f   :  { %193 = vsyncpa [#allocation4], 1 }
 0x140   :  { %194 = vsyncpa [#allocation7], 1 }

</bundles_post_ra>
